<compile_context>
chip_gen: v7x
topology: tpu7x:2x2x1
jax: 0.10.0
libtpu: 0.0.40
codegen_flags: <defaults>
</compile_context>

<pallas_src>
import math

import jax
import jax.numpy as jnp
from jax.experimental import pallas as pl
from jax.experimental.pallas import tpu as pltpu


def _round_up(x: int, m: int) -> int:
    return (x + m - 1) // m * m


def _fused_mlp_kernel(x_ref, w_ref, b_ref, o_ref, h_ref):
    """Fused depth-layer MLP on one row tile.

    x_ref: (tm, F)        bf16  padded input rows
    w_ref: (depth, F, F)  bf16  stacked, pre-transposed, zero-padded weights
    b_ref: (depth, 1, F)  f32   stacked, zero-padded biases
    o_ref: (tm, F)        f32   output rows (last layer stored from f32 epilogue)
    h_ref: (tm, F)        bf16  VMEM scratch holding the running activation
    """
    depth = w_ref.shape[0]
    h_ref[...] = x_ref[...]
    for layer in range(depth):                    # static unroll; depth is small
        y = jnp.dot(h_ref[...], w_ref[layer],
                    preferred_element_type=jnp.float32)   # bf16 MXU, f32 accumulate
        y = jnp.maximum(y + b_ref[layer], 0.0)             # bias + ReLU in f32
        # TODO(synk): training-mode Dropout (random mask + 1/(1-p) scale) omitted;
        # this matches eval()-mode Dropout (identity).
        if layer + 1 < depth:
            h_ref[...] = y.astype(h_ref.dtype)              # bf16 storage for next layer
        else:
            o_ref[...] = y.astype(o_ref.dtype)


def init_mlp_params(key, input_size, layer_size, depth, param_dtype=jnp.bfloat16):
    """nn.Linear-style init (kaiming-uniform W, uniform b in +-1/sqrt(fan_in)).

    Returns (params, raw):
      params['w']: [depth, F, F] param_dtype  -- W.T, zero-padded to F=mult of 128
      params['b']: [depth, 1, F] float32      -- zero-padded biases
      raw: list of (W, b) float32 in original PyTorch shapes (for reference check)
    """
    max_f = max(_round_up(input_size, 128), _round_up(layer_size, 128))
    w_stack, b_stack, raw = [], [], []
    in_f = input_size
    for _ in range(depth):
        key, kw, kb = jax.random.split(key, 3)
        bound_w = math.sqrt(3.0 / in_f)                    # kaiming_uniform(a=sqrt(5))
        w = jax.random.uniform(kw, (layer_size, in_f), jnp.float32,
                               minval=-bound_w, maxval=bound_w)
        bound_b = 1.0 / math.sqrt(in_f)
        b = jax.random.uniform(kb, (layer_size,), jnp.float32,
                               minval=-bound_b, maxval=bound_b)
        raw.append((w, b))
        w_t = jnp.zeros((max_f, max_f), jnp.float32).at[:in_f, :layer_size].set(w.T)
        b_p = jnp.zeros((max_f,), jnp.float32).at[:layer_size].set(b)
        w_stack.append(w_t.astype(param_dtype))
        b_stack.append(b_p)
        in_f = layer_size
    params = {
        "w": jnp.stack(w_stack),                             # (depth, F, F)
        "b": jnp.stack(b_stack).reshape(depth, 1, max_f),    # (depth, 1, F)
        "input_size": input_size,
        "layer_size": layer_size,
        "max_f": max_f,
    }
    return params, raw


def mlp_forward(x, params, *, tm=256):
    """x: [N, input_size] float32 -> [N, layer_size] float32 (fused MLP kernel)."""
    n, in_f = x.shape
    max_f = params["max_f"]
    out_f = params["layer_size"]
    w = params["w"]
    b = params["b"]
    depth = w.shape[0]
    compute_dtype = w.dtype

    # Large, aligned row tiles; clamp so tiny inputs don't over-pad.
    tm = max(8, min(tm, _round_up(n, 8)))
    n_p = _round_up(n, tm)
    grid = (n_p // tm,)

    # Zero-pad rows and features once in the wrapper. Exact: padded input cols
    # hit zero weight rows, padded bias entries are zero, so padded outputs stay 0.
    x_p = jnp.zeros((n_p, max_f), compute_dtype).at[:n, :in_f].set(
        x.astype(compute_dtype))

    itemsize = jnp.dtype(compute_dtype).itemsize
    cost = pl.CostEstimate(
        flops=int(2 * n_p * max_f * max_f * depth),
        transcendentals=0,
        bytes_accessed=int(x_p.size * itemsize + w.size * itemsize
                           + b.size * 4 + n_p * max_f * 4),
    )

    out = pl.pallas_call(
        _fused_mlp_kernel,
        out_shape=jax.ShapeDtypeStruct((n_p, max_f), jnp.float32),
        grid_spec=pltpu.PrefetchScalarGridSpec(
            num_scalar_prefetch=0,
            grid=grid,
            in_specs=[
                pl.BlockSpec((tm, max_f), lambda i: (i, 0)),               # x row tile
                pl.BlockSpec((depth, max_f, max_f), lambda i: (0, 0, 0)),  # all weights
                pl.BlockSpec((depth, 1, max_f), lambda i: (0, 0, 0)),      # all biases
            ],
            out_specs=pl.BlockSpec((tm, max_f), lambda i: (i, 0)),
            scratch_shapes=[pltpu.VMEM((tm, max_f), compute_dtype)],       # activation
        ),
        compiler_params=pltpu.CompilerParams(
            dimension_semantics=("parallel",),   # row axis shards across TCs
            vmem_limit_bytes=64 * 1024 * 1024,
        ),
        cost_estimate=cost,
    )(x_p, w, b)
    # TODO(synk): for layer_size >= ~2048 (weights no longer comfortably VMEM
    # resident, especially on v7x's 64 MiB), add K/N grid axes + f32 accumulator.
    return out[:n, :out_f]


if __name__ == "__main__":
    key = jax.random.PRNGKey(0)

    batch, seq = 2, 8
    input_size, layer_size, depth = 32, 32, 2

    kx, kp = jax.random.split(key)
    x = jax.random.normal(kx, (batch, seq, input_size), jnp.float32)
    params, raw = init_mlp_params(kp, input_size, layer_size, depth)

    # Flatten leading dims (Linear acts on the last axis), run the fused kernel.
    x2d = x.reshape(batch * seq, input_size)
    out = mlp_forward(x2d, params)
    out = out.reshape(batch, seq, layer_size)
    jax.block_until_ready(out)

    # Pure-JAX reference with the identical bf16-storage / f32-accumulate pattern.
    h = x2d.astype(jnp.bfloat16)
    y = None
    for w_raw, b_raw in raw:
        y = jnp.dot(h, jnp.transpose(w_raw).astype(jnp.bfloat16),
                    preferred_element_type=jnp.float32) + b_raw
        y = jnp.maximum(y, 0.0)
        h = y.astype(jnp.bfloat16)
    ref = y.reshape(batch, seq, layer_size)

    max_err = float(jnp.max(jnp.abs(out - ref)))
    assert jnp.allclose(out, ref, atol=1e-2, rtol=1e-2), max_err

    print("KERNEL_OK")
</pallas_src>

<mosaic_0001>
module attributes {stable_mosaic.version = 11 : i64} {
  func.func @_fused_mlp_kernel(%arg0: i32, %arg1: memref<16x128xbf16, #tpu.memory_space<vmem>>, %arg2: memref<2x128x128xbf16, #tpu.memory_space<vmem>>, %arg3: memref<2x1x128xf32, #tpu.memory_space<vmem>>, %arg4: memref<16x128xf32, #tpu.memory_space<vmem>>, %arg5: memref<16x128xbf16, #tpu.memory_space<vmem>>) attributes {dimension_semantics = [#tpu.dimension_semantics<parallel>], iteration_bounds = array<i64: 1>, scalar_prefetch = 0 : i64, scratch_operands = 1 : i64, tpu.core_type = #tpu.core_type<tc>, window_params = [{transform_indices = @transform_0, window_bounds = array<i64: 16, 128>}, {pipeline_mode = #tpu.pipeline_mode<synchronous>, transform_indices = @transform_1, window_bounds = array<i64: 2, 128, 128>}, {pipeline_mode = #tpu.pipeline_mode<synchronous>, transform_indices = @transform_2, window_bounds = array<i64: 2, 1, 128>}, {transform_indices = @transform_3, window_bounds = array<i64: 16, 128>}]} {
    %c0 = arith.constant 0 : index
    %c0_0 = arith.constant 0 : index
    %0 = vector.load %arg1[%c0, %c0_0] : memref<16x128xbf16, #tpu.memory_space<vmem>>, vector<16x128xbf16>
    %c0_1 = arith.constant 0 : index
    %c0_2 = arith.constant 0 : index
    %1 = vector.load %arg5[%c0_1, %c0_2] : memref<16x128xbf16, #tpu.memory_space<vmem>>, vector<16x128xbf16>
    tpu.vector_store %arg5[%c0_1, %c0_2], %0 {strides = array<i32>} : memref<16x128xbf16, #tpu.memory_space<vmem>>, vector<16x128xbf16>,
    %c0_3 = arith.constant 0 : index
    %c0_4 = arith.constant 0 : index
    %2 = vector.load %arg5[%c0_3, %c0_4] : memref<16x128xbf16, #tpu.memory_space<vmem>>, vector<16x128xbf16>
    %c0_5 = arith.constant 0 : index
    %c0_6 = arith.constant 0 : index
    %c0_7 = arith.constant 0 : index
    %3 = vector.load %arg2[%c0_5, %c0_6, %c0_7] : memref<2x128x128xbf16, #tpu.memory_space<vmem>>, vector<1x128x128xbf16>
    %4 = vector.shape_cast %3 : vector<1x128x128xbf16> to vector<128x128xbf16>
    %cst = arith.constant dense<0.000000e+00> : vector<16x128xf32>
    %5 = tpu.matmul %2, %4, %cst {dimension_numbers = #tpu.dot_dimension_numbers<[1], [0], [0], [1], [0, 0, 1, 1], [], []>} : vector<16x128xbf16>, vector<128x128xbf16>, vector<16x128xf32> -> vector<16x128xf32>
    %c0_8 = arith.constant 0 : index
    %c0_9 = arith.constant 0 : index
    %c0_10 = arith.constant 0 : index
    %6 = vector.load %arg3[%c0_8, %c0_9, %c0_10] : memref<2x1x128xf32, #tpu.memory_space<vmem>>, vector<1x1x128xf32>
    %7 = vector.shape_cast %6 : vector<1x1x128xf32> to vector<1x128xf32>
    %8 = vector.broadcast %7 : vector<1x128xf32> to vector<16x128xf32>
    %9 = arith.addf %5, %8 : vector<16x128xf32>
    %cst_11 = arith.constant 0.000000e+00 : f32
    %10 = vector.broadcast %cst_11 : f32 to vector<16x128xf32>
    %11 = arith.maximumf %9, %10 : vector<16x128xf32>
    %12 = arith.truncf %11 : vector<16x128xf32> to vector<16x128xbf16>
    %c0_12 = arith.constant 0 : index
    %c0_13 = arith.constant 0 : index
    %13 = vector.load %arg5[%c0_12, %c0_13] : memref<16x128xbf16, #tpu.memory_space<vmem>>, vector<16x128xbf16>
    tpu.vector_store %arg5[%c0_12, %c0_13], %12 {strides = array<i32>} : memref<16x128xbf16, #tpu.memory_space<vmem>>, vector<16x128xbf16>,
    %c0_14 = arith.constant 0 : index
    %c0_15 = arith.constant 0 : index
    %14 = vector.load %arg5[%c0_14, %c0_15] : memref<16x128xbf16, #tpu.memory_space<vmem>>, vector<16x128xbf16>
    %c1 = arith.constant 1 : index
    %c0_16 = arith.constant 0 : index
    %c0_17 = arith.constant 0 : index
    %15 = vector.load %arg2[%c1, %c0_16, %c0_17] : memref<2x128x128xbf16, #tpu.memory_space<vmem>>, vector<1x128x128xbf16>
    %16 = vector.shape_cast %15 : vector<1x128x128xbf16> to vector<128x128xbf16>
    %cst_18 = arith.constant dense<0.000000e+00> : vector<16x128xf32>
    %17 = tpu.matmul %14, %16, %cst_18 {dimension_numbers = #tpu.dot_dimension_numbers<[1], [0], [0], [1], [0, 0, 1, 1], [], []>} : vector<16x128xbf16>, vector<128x128xbf16>, vector<16x128xf32> -> vector<16x128xf32>
    %c1_19 = arith.constant 1 : index
    %c0_20 = arith.constant 0 : index
    %c0_21 = arith.constant 0 : index
    %18 = vector.load %arg3[%c1_19, %c0_20, %c0_21] : memref<2x1x128xf32, #tpu.memory_space<vmem>>, vector<1x1x128xf32>
    %19 = vector.shape_cast %18 : vector<1x1x128xf32> to vector<1x128xf32>
    %20 = vector.broadcast %19 : vector<1x128xf32> to vector<16x128xf32>
    %21 = arith.addf %17, %20 : vector<16x128xf32>
    %cst_22 = arith.constant 0.000000e+00 : f32
    %22 = vector.broadcast %cst_22 : f32 to vector<16x128xf32>
    %23 = arith.maximumf %21, %22 : vector<16x128xf32>
    %c0_23 = arith.constant 0 : index
    %c0_24 = arith.constant 0 : index
    %24 = vector.load %arg4[%c0_23, %c0_24] : memref<16x128xf32, #tpu.memory_space<vmem>>, vector<16x128xf32>
    tpu.vector_store %arg4[%c0_23, %c0_24], %23 {strides = array<i32>} : memref<16x128xf32, #tpu.memory_space<vmem>>, vector<16x128xf32>,
    return
  }
  func.func @transform_0(%arg0: i32) -> (i32, i32) {
    %c0_i32 = arith.constant 0 : i32
    %c0_i32_0 = arith.constant 0 : i32
    return %arg0, %c0_i32 : i32, i32
  }
  func.func @transform_1(%arg0: i32) -> (i32, i32, i32) {
    %c0_i32 = arith.constant 0 : i32
    %c0_i32_0 = arith.constant 0 : i32
    %c0_i32_1 = arith.constant 0 : i32
    %c0_i32_2 = arith.constant 0 : i32
    return %c0_i32, %c0_i32_0, %c0_i32_1 : i32, i32, i32
  }
  func.func @transform_2(%arg0: i32) -> (i32, i32, i32) {
    %c0_i32 = arith.constant 0 : i32
    %c0_i32_0 = arith.constant 0 : i32
    %c0_i32_1 = arith.constant 0 : i32
    %c0_i32_2 = arith.constant 0 : i32
    return %c0_i32, %c0_i32_0, %c0_i32_1 : i32, i32, i32
  }
  func.func @transform_3(%arg0: i32) -> (i32, i32) {
    %c0_i32 = arith.constant 0 : i32
    %c0_i32_0 = arith.constant 0 : i32
    return %arg0, %c0_i32 : i32, i32
  }
}

</mosaic_0001>

<bundles_post_ra>
// kernel: tpu_custom_call.1
= control target key start
LH: loop header
LB: loop body
LE: loop exit
PB: predicated region body
PF: predicated region fallthrough
CT: control target
= control target key end

     0   :  { %8 = vsyncpa [#allocation4], 0  ;;  %s607_s0 = inlined_call_operand.hbm [shape: bf16[16,128], index: 0, kind: input, shape index: {}]   ;;  %s608_s1 = inlined_call_operand.hbm [shape: bf16[2,128,128], index: 1, kind: input, shape index: {}]   ;;  %s609_s2 = inlined_call_operand.hbm [shape: f32[2,1,128], index: 2, kind: input, shape index: {}]   ;;  %s610_s3 = inlined_call_operand.hbm [shape: f32[16,128], index: 3, kind: output, shape index: {}]  }
   0x1   :  { %9 = vsyncpa [#allocation7], 0 }
   0x2   :  { %10 = vsyncpa [#allocation5], 0  ;;  %s520_s12 = smov [#allocation6]   ;;  %s521_s14 = smov [#allocation3]  }
   0x3   :  { %s28_s13 = sshll.u32 %s520_s12, 4  ;;  %s16_s15 = sshll.u32 %s521_s14, 4  ;;  %s29_s13 = int_to_ptr.vmem [resolvable:$true] %s28_s13  ;;  %s552_s15 = int_to_ptr.vmem [resolvable:$true] %s16_s15 }
   0x4   :  { %s426_s18 = scalar_lea.hbm %s608_s1, 2048 }
   0x5   :  { %p427_p0 = scmp.ne.s32.totalorder %s608_s1, %s426_s18  ;;  %p430_p1 = scmp.lt.u32.totalorder %s426_s18, %s608_s1 }
   0x7   :  { %p432_p2 = pnand %p430_p1, %p427_p0 }
   0x9   :  { %435 = shalt.err (!%p432_p2)
}
   0xa   :  { %s436_s23 = scalar_lea.vmem %s29_s13, 2048  ;;  %p441_p4 = scmp.lt.s32.totalorder %s29_s13, %s29_s13 }
   0xb   :  { %p437_p3 = scmp.ne.s32.totalorder %s29_s13, %s436_s23  ;;  %p442_p5 = scmp.lt.s32.totalorder %s436_s23, %s436_s23 }
   0xd   :  { %p443_p6 = por %p442_p5, %p441_p4 }
   0xf   :  { %p444_p7 = pnand %p443_p6, %p437_p3 }
  0x11   :  { %447 = shalt.err (!%p444_p7)
}
  0x12   :  { %s522_s24 = smov 64   ;;  %s523_s25 = smov 4  }
  0x13   :  { %34 = dma.hbm_to_vmem [thread:$0]  %s608_s1, 2048, %s29_s13, [#allocation7], %s522_s24, %s522_s24, %s523_s25  }
  0x14   :  { %s448_s30 = scalar_lea.hbm %s607_s0, 128 }
  0x15   :  { %p449_p8 = scmp.ne.s32.totalorder %s607_s0, %s448_s30  ;;  %p452_p9 = scmp.lt.u32.totalorder %s448_s30, %s607_s0 }
  0x17   :  { %p454_p10 = pnand %p452_p9, %p449_p8 }
  0x19   :  { %457 = shalt.err (!%p454_p10)
}
  0x1a   :  { %s458_s8 = scalar_lea.vmem %s552_s15, 128  ;;  %p463_p12 = scmp.lt.s32.totalorder %s552_s15, %s552_s15 }
  0x1b   :  { %p459_p11 = scmp.ne.s32.totalorder %s552_s15, %s458_s8  ;;  %p464_p13 = scmp.lt.s32.totalorder %s458_s8, %s458_s8 }
  0x1d   :  { %p465_p0 = por %p464_p13, %p463_p12 }
  0x1f   :  { %p466_p1 = pnand %p465_p0, %p459_p11 }
  0x21   :  { %469 = shalt.err (!%p466_p1)
}
  0x22   :  { %22 = dma.hbm_to_vmem [thread:$0]  %s607_s0, 128, %s552_s15, [#allocation4], %s522_s24, %s522_s24, %s523_s25  }
  0x23   :  { %s524_s10 = smov [#allocation8]   ;;  %s470_s14 = scalar_lea.hbm %s609_s2, 32 }
  0x24   :  { %s40_s11 = sshll.u32 %s524_s10, 4  ;;  %p471_p2 = scmp.ne.s32.totalorder %s609_s2, %s470_s14  ;;  %s41_s11 = int_to_ptr.vmem [resolvable:$true] %s40_s11 }
  0x25   :  { %p474_p3 = scmp.lt.u32.totalorder %s470_s14, %s609_s2 }
  0x27   :  { %p476_p4 = pnand %p474_p3, %p471_p2 }
  0x29   :  { %479 = shalt.err (!%p476_p4)
}
  0x2a   :  { %s480_s20 = scalar_lea.vmem %s41_s11, 32  ;;  %p485_p6 = scmp.lt.s32.totalorder %s41_s11, %s41_s11 }
  0x2b   :  { %p481_p5 = scmp.ne.s32.totalorder %s41_s11, %s480_s20  ;;  %p486_p7 = scmp.lt.s32.totalorder %s480_s20, %s480_s20 }
  0x2d   :  { %p487_p8 = por %p486_p7, %p485_p6 }
  0x2f   :  { %p488_p9 = pnand %p487_p8, %p481_p5 }
  0x31   :  { %491 = shalt.err (!%p488_p9)
}
  0x32   :  { %s525_s0 = smov 16   ;;  %s526_s15 = smov 1  }
  0x33   :  { %46 = dma.hbm_to_vmem [thread:$0]  %s609_s2, 32, %s41_s11, [#allocation7], %s525_s0, %s525_s0, %s526_s15  }
  0x34   :  { %514 = dma.done.wait [#allocation4], 128  }
  0x35   :  { %515 = vsyncadd [#allocation4], 4294967168 }
  0x36   :  { %516 = dma.done.wait [#allocation7], 2080  }
  0x37   :  { %517 = vsyncadd [#allocation7], 4294965216  ;;  %v527_v0 = vmov 0.0   ;;  %vm528_vm0 = vmmov 0   ;;  %v409_v1 = vld [vmem:[#allocation6] sm:$0xff]   ;;  %v410_v2 = vld [vmem:[#allocation6 + $0x8] sm:$0xff]  }
  0x38   :  { %357 = vmatprep.subr.bf16.mxu0 %v527_v0  ;;  %373 = vmatprep.mubr.msk.bf16.mxu0 %vm528_vm0, %v527_v0  ;;  %v411_v3 = vld [vmem:[#allocation6 + $0x10] sm:$0xff]   ;;  %v418_v4 = vld [vmem:[#allocation6 + $0x40] sm:$0xff]   ;;  %v412_v5 = vld [vmem:[#allocation6 + $0x18] sm:$0xff]   ;;  %s529_s2 = smov [#allocation9]  }
  0x39   :  { %377 = vmatprep.subr.bf16.mxu1 %v527_v0  ;;  %393 = vmatprep.mubr.msk.bf16.mxu1 %vm528_vm0, %v527_v0  ;;  %v419_v6 = vld [vmem:[#allocation6 + $0x48] sm:$0xff]   ;;  %v413_v7 = vld [vmem:[#allocation6 + $0x20] sm:$0xff]   ;;  %v420_v8 = vld [vmem:[#allocation6 + $0x50] sm:$0xff]   ;;  %s307_s23 = sshll.u32 %s529_s2, 4  ;;  %s308_s23 = int_to_ptr.vmem [resolvable:$true] %s307_s23 }
  0x3a   :  { %358 = vmatpush3.bf16.msra.mxu0 %v409_v1  ;;  %378 = vmatpush3.bf16.msra.mxu1 %v418_v4  ;;  %v414_v9 = vld [vmem:[#allocation6 + $0x28] sm:$0xff]   ;;  %v421_v10 = vld [vmem:[#allocation6 + $0x58] sm:$0xff]   ;;  %v415_v11 = vld [vmem:[#allocation6 + $0x30] sm:$0xff]   ;;  %s492_s24 = scalar_lea.vmem %s308_s23, 256  ;;  %p497_p11 = scmp.lt.s32.totalorder %s308_s23, %s308_s23 }
  0x3b   :  { %359 = vmatprep.subr.bf16.mxu0 %v527_v0  ;;  %379 = vmatprep.subr.bf16.mxu1 %v527_v0  ;;  %v422_v12 = vld [vmem:[#allocation6 + $0x60] sm:$0xff]   ;;  %v416_v13 = vld [vmem:[#allocation6 + $0x38] sm:$0xff]   ;;  %v423_v14 = vld [vmem:[#allocation6 + $0x68] sm:$0xff]   ;;  %p493_p10 = scmp.ne.s32.totalorder %s308_s23, %s492_s24  ;;  %p498_p12 = scmp.lt.s32.totalorder %s492_s24, %s492_s24 }
  0x3c   :  { %v417_v15 = vld [vmem:[#allocation3] sm:$0xff]   ;;  %v424_v16 = vld [vmem:[#allocation6 + $0x70] sm:$0xff]   ;;  %v321_v18 = vld [vmem:[#allocation8] ss:$0 sm:$0xff] }
  0x3d   :  { %v425_v17 = vld [vmem:[#allocation6 + $0x78] sm:$0xff]   ;;  %v330_v28 = vld [vmem:[#allocation8 + $0x1] ss:$0 sm:$0xff]  ;;  %p499_p13 = por %p498_p12, %p497_p11 }
  0x3e   :  { %360 = vmatpush3.bf16.msra.mxu0 %v410_v2  ;;  %380 = vmatpush3.bf16.msra.mxu1 %v419_v6 }
  0x3f   :  { %361 = vmatprep.subr.bf16.mxu0 %v527_v0  ;;  %381 = vmatprep.subr.bf16.mxu1 %v527_v0  ;;  %p500_p0 = pnand %p499_p13, %p493_p10 }
  0x42   :  { %362 = vmatpush3.bf16.msra.mxu0 %v411_v3  ;;  %382 = vmatpush3.bf16.msra.mxu1 %v420_v8 }
  0x43   :  { %363 = vmatprep.subr.bf16.mxu0 %v527_v0  ;;  %383 = vmatprep.subr.bf16.mxu1 %v527_v0 }
  0x46   :  { %364 = vmatpush3.bf16.msra.mxu0 %v412_v5  ;;  %384 = vmatpush3.bf16.msra.mxu1 %v421_v10 }
  0x47   :  { %365 = vmatprep.subr.bf16.mxu0 %v527_v0  ;;  %385 = vmatprep.subr.bf16.mxu1 %v527_v0 }
  0x4a   :  { %366 = vmatpush3.bf16.msra.mxu0 %v413_v7  ;;  %386 = vmatpush3.bf16.msra.mxu1 %v422_v12 }
  0x4b   :  { %367 = vmatprep.subr.bf16.mxu0 %v527_v0  ;;  %387 = vmatprep.subr.bf16.mxu1 %v527_v0 }
  0x4e   :  { %368 = vmatpush3.bf16.msra.mxu0 %v414_v9  ;;  %388 = vmatpush3.bf16.msra.mxu1 %v423_v14 }
  0x4f   :  { %369 = vmatprep.subr.bf16.mxu0 %v527_v0  ;;  %389 = vmatprep.subr.bf16.mxu1 %v527_v0 }
  0x52   :  { %370 = vmatpush3.bf16.msra.mxu0 %v415_v11  ;;  %390 = vmatpush3.bf16.msra.mxu1 %v424_v16 }
  0x53   :  { %371 = vmatprep.subr.bf16.mxu0 %v527_v0  ;;  %391 = vmatprep.subr.bf16.mxu1 %v527_v0 }
  0x56   :  { %372 = vmatpush3.bf16.msra.mxu0 %v416_v13  ;;  %392 = vmatpush3.bf16.msra.mxu1 %v425_v17 }
  0x59   :  { %374 = vmatmul.mubr.bf16.vlgmr.msra.gmra.mrb[0].mxu0 %v417_v15 }
 0x12c   :  { %v172_v19 = vpop.f32.mrb[0].mxu0 }
 0x12d   :  { %v173_v20 = vadd.f32 %v321_v18, %v172_v19  ;;  %v375_v21 = vpop.f32.mrb[1].mxu0 }
 0x12e   :  { %v175_v22 = vpop.f32.mrb[2].mxu0 }
 0x12f   :  { %v176_v23 = vadd.f32 %v321_v18, %v175_v22  ;;  %v376_v24 = vpop.f32.mrb[3].mxu0  ;;  %v179_v25 = vmax.f32 %v173_v20, 0.0 }
 0x131   :  { %v180_v26 = vmax.f32 %v176_v23, 0.0 }
 0x133   :  { %v181_v27 = vpack.c.bf16 %v180_v26, %v179_v25 }
 0x135   :  { %394 = vmatmul.mubr.bf16.vlgmr.msra.gmra.mrb[0].mxu1 %v181_v27 }
 0x208   :  { %v291_v29 = vpop.f32.mrb[0].mxu1 }
 0x209   :  { %v292_v30 = vadd.f32 %v330_v28, %v291_v29  ;;  %v395_v31 = vpop.f32.mrb[1].mxu1 }
 0x20a   :  { %v294_v32 = vpop.f32.mrb[2].mxu1 }
 0x20b   :  { %v298_v33 = vmax.f32 %v292_v30, 0.0  ;;  %v295_v34 = vadd.f32 %v330_v28, %v294_v32  ;;  %v396_v35 = vpop.f32.mrb[3].mxu1 }
 0x20d   :  { %300 = vst [vmem:[#allocation9] sm:$0xff] %v298_v33  ;;  %v299_v36 = vmax.f32 %v295_v34, 0.0 }
 0x20f   :  { %301 = vst [vmem:[#allocation9 + $0x8] sm:$0xff] %v299_v36 }
 0x210   :  { %503 = shalt.err (!%p500_p0)
}
 0x211   :  { %s504_s27 = scalar_lea.hbm %s610_s3, 256 }
 0x212   :  { %p505_p1 = scmp.ne.s32.totalorder %s610_s3, %s504_s27  ;;  %p508_p2 = scmp.lt.u32.totalorder %s504_s27, %s610_s3 }
 0x214   :  { %p510_p3 = pnand %p508_p2, %p505_p1 }
 0x216   :  { %513 = shalt.err (!%p510_p3)
}
 0x217   :  { %s530_s5 = smov 128   ;;  %s531_s6 = smov 8  }
 0x218   :  { %313 = dma.vmem_to_hbm [thread:$0]  %s308_s23, 256, %s610_s3, [#allocation5], %s530_s5, %s530_s5, %s531_s6  }
 0x219   :  { %518 = dma.done.wait [#allocation5], 256  }
 0x21a   :  { %519 = vsyncadd [#allocation5], 4294967040 }
 0x21b   :  { %317 = vsyncpa [#allocation4], 1 }
 0x21c   :  { %318 = vsyncpa [#allocation7], 1 }
 0x21d   :  { %319 = vsyncpa [#allocation5], 1 }

</bundles_post_ra>
